<compile_context>
chip_gen: v7x
topology: tpu7x:2x2x1
jax: 0.10.0
libtpu: 0.0.40
codegen_flags: <defaults>
</compile_context>

<pallas_src>
from functools import partial

import numpy as np
import jax
import jax.numpy as jnp
from jax import lax
from jax.experimental import pallas as pl
from jax.experimental.pallas import tpu as pltpu

NCH = 16        # decoder channels
KT = 5          # ConvTranspose1d kernel size
KC = 3          # Conv1d kernel size
STRIDE = 2
PAD_T = 2       # ConvTranspose1d padding
OUTPAD = 1      # ConvTranspose1d output_padding
PAD_C = 1       # Conv1d padding

LANES_MIN = 512     # target lane width per block (unmasked, dense stores)
LANES_MAX = 4096    # cap so intermediates stay well inside VMEM on v5e/v6e/v7x


# ---------------------------------------------------------------------------
# Kernel: full decoder forward for one batch group (batch folded along lanes)
# ---------------------------------------------------------------------------
def _decoder_kernel(x_ref, mask_ref, t1_ref, b1_ref, w2_ref, b2_ref,
                    w3m_ref, w3l_ref, w3r_ref, b3_ref, o_ref, *, mxu_dtype):
    """x (1,1,LBp) -> phase-major output (1,4,LBp); LBp = pad128(BB*L)."""
    x = x_ref[0]                       # (1, LBp) f32
    mask_l = mask_ref[0:1, :]          # keep-mask after left shift  (0 at segment end)
    mask_r = mask_ref[1:2, :]          # keep-mask after right shift (0 at segment start)
    n = x.shape[-1]

    # +/-1 lane shifts via XLU rotate + segment mask (no slice/concat copies,
    # wraparound lanes are always masked or land in discarded pad lanes).
    def shift_left(a):                 # a[:, c] <- a[:, c+1]
        return pltpu.roll(a, shift=n - 1, axis=1) * mask_l

    def shift_right(a):                # a[:, c] <- a[:, c-1]
        return pltpu.roll(a, shift=1, axis=1) * mask_r

    # ---- layer 1: ConvTranspose1d(1 -> 16, K=5, s=2, p=2, op=1), Cin == 1 ----
    # Degenerate outer product -> VPU broadcast multiply-adds only (f32).
    t1 = t1_ref[...]                   # (16, 5): taps k=0..4
    b1 = b1_ref[...]                   # (16, 1)
    x_l = shift_left(x)                # x[m+1]
    x_r = shift_right(x)               # x[m-1]
    h1e = jnp.maximum(t1[:, 4:5] * x_r + t1[:, 2:3] * x + t1[:, 0:1] * x_l + b1, 0.0)
    h1o = jnp.maximum(t1[:, 3:4] * x + t1[:, 1:2] * x_l + b1, 0.0)   # (16, LBp) each

    # ---- layer 2: ConvTranspose1d(16 -> 16) as ONE (64,64)@(64,LBp) matmul ----
    # Stacked operand order: [sr(h1_odd); h1_even; h1_odd; sl(h1_even)];
    # output row-block p is phase t = 4m + p of the layer-2 output.
    w2 = w2_ref[...].astype(mxu_dtype)                               # (64, 64)
    stacked1 = jnp.concatenate(
        [shift_right(h1o), h1e, h1o, shift_left(h1e)], axis=0).astype(mxu_dtype)
    h2 = jnp.maximum(
        jnp.dot(w2, stacked1, preferred_element_type=jnp.float32) + b2_ref[...],
        0.0)                                                         # (64, LBp) f32

    # ---- layer 3: Conv1d(16 -> 1, K=3, p=1) without the 96-row stacked temp ----
    # Main (4,64)@(64,LBp) matmul on h2 directly + two tiny edge corrections:
    #   phase 0 += k0 . sr(phase3),   phase 3 += k2 . sl(phase0)
    y = jnp.dot(w3m_ref[...].astype(mxu_dtype), h2.astype(mxu_dtype),
                preferred_element_type=jnp.float32)                  # (4, LBp)
    y = y + jnp.dot(w3l_ref[...].astype(mxu_dtype),
                    shift_right(h2[48:64, :]).astype(mxu_dtype),
                    preferred_element_type=jnp.float32)
    y = y + jnp.dot(w3r_ref[...].astype(mxu_dtype),
                    shift_left(h2[0:16, :]).astype(mxu_dtype),
                    preferred_element_type=jnp.float32)
    o_ref[0] = y + b3_ref[...]


# ---------------------------------------------------------------------------
# Trace-time weight packing (polyphase block weights), all f32; cast in-kernel
# ---------------------------------------------------------------------------
def _pack_params(params):
    w1 = params["w1"].astype(jnp.float32)   # (1, 16, 5)   ConvT weight (Cin, Cout, K)
    b1 = params["b1"].astype(jnp.float32)   # (16,)
    w2 = params["w2"].astype(jnp.float32)   # (16, 16, 5)
    b2 = params["b2"].astype(jnp.float32)   # (16,)
    w3 = params["w3"].astype(jnp.float32)   # (1, 16, 3)   Conv1d weight (Cout, Cin, K)
    b3 = params["b3"].astype(jnp.float32)   # (1,)

    t1 = w1[0]                                            # (16, 5)
    b1c = b1.reshape(NCH, 1)                              # (16, 1)

    # layer 2: block weight acting on [sr(h1_odd); h1_even; h1_odd; sl(h1_even)]
    Wk = [w2[:, :, k].T for k in range(KT)]               # Wk[k][co, ci] = w2[ci, co, k]
    Z = jnp.zeros((NCH, NCH), jnp.float32)
    W2 = jnp.block([
        [Wk[4], Wk[2], Wk[0], Z],                         # output phase t = 4m
        [Z,     Wk[3], Wk[1], Z],                         # t = 4m + 1
        [Z,     Wk[4], Wk[2], Wk[0]],                     # t = 4m + 2
        [Z,     Z,     Wk[3], Wk[1]],                     # t = 4m + 3
    ])                                                    # (64, 64)
    b2c = jnp.tile(b2.reshape(NCH, 1), (4, 1))            # (64, 1)

    # layer 3 decomposed:
    #   W3m acts on h2 = [ph0; ph1; ph2; ph3]
    #   W3l acts on sr(ph3)   (only output phase 0)
    #   W3r acts on sl(ph0)   (only output phase 3)
    k0, k1, k2 = (w3[0, :, k].reshape(1, NCH) for k in range(KC))
    z = jnp.zeros((1, NCH), jnp.float32)
    W3m = jnp.block([
        [k1, k2, z,  z],                                  # phase 0 (minus edge term)
        [k0, k1, k2, z],                                  # phase 1
        [z,  k0, k1, k2],                                 # phase 2
        [z,  z,  k0, k1],                                 # phase 3 (minus edge term)
    ])                                                    # (4, 64)
    W3l = jnp.concatenate([k0, z, z, z], axis=0)          # (4, 16)
    W3r = jnp.concatenate([z, z, z, k2], axis=0)          # (4, 16)
    b3c = jnp.tile(b3.reshape(1, 1), (4, 1))              # (4, 1)
    return t1, b1c, W2, b2c, W3m, W3l, W3r, b3c


# ---------------------------------------------------------------------------
# Wrapper
# ---------------------------------------------------------------------------
def my_decoder_forward(x, params, *, mxu_bf16=True):
    """x: (B, L) or (B, 1, L) float32 -> (B, 1, 4L) float32."""
    if x.ndim == 2:
        x = x[:, None, :]
    x = x.astype(jnp.float32)
    B, cin, L = x.shape
    assert cin == 1
    L_out = 4 * L

    # ---- block sizing: lane width is BB*L (batch rows folded along lanes) ----
    BB = min(B, max(1, -(-LANES_MIN // L)))     # reach >= 512 lanes when batch allows
    BB = min(BB, max(1, LANES_MAX // L))        # VMEM-friendly cap (v7x 64 MiB incl.)
    if B * L >= 2 * 128:                        # enough work to feed v7x's 2 TCs
        BB = min(BB, (B + 1) // 2)              # -> at least 2 parallel grid steps
    BB = max(BB, 1)
    nb = -(-B // BB)                            # number of grid steps
    Bp = nb * BB
    LB = BB * L                                 # real lanes per block
    LBp = -(-LB // 128) * 128                   # pad to multiple of 128 (dense stores)

    if Bp != B:
        x = jnp.concatenate([x, jnp.zeros((Bp - B, 1, L), jnp.float32)], axis=0)
    x2 = x[:, 0, :].reshape(nb, LB)             # lane index = bb*L + m
    if LBp != LB:
        x2 = jnp.pad(x2, ((0, 0), (0, LBp - LB)))
    x_blk = x2.reshape(nb, 1, LBp)

    # Static keep-masks so +/-1 lane shifts never leak across batch rows / pad.
    lane = np.arange(LBp)
    masks = jnp.asarray(np.stack([(lane % L != L - 1),   # after left shift
                                  (lane % L != 0)],      # after right shift
                                 axis=0).astype(np.float32))          # (2, LBp)

    t1, b1c, W2, b2c, W3m, W3l, W3r, b3c = _pack_params(params)
    mxu_dtype = jnp.bfloat16 if mxu_bf16 else jnp.float32

    weight_bytes = 4 * (t1.size + b1c.size + W2.size + b2c.size
                        + W3m.size + W3l.size + W3r.size + b3c.size + masks.size)
    cost = pl.CostEstimate(
        flops=2 * (64 * 64 + 4 * 64 + 2 * 4 * 16) * LBp * nb + 12 * NCH * LBp * nb,
        transcendentals=0,
        bytes_accessed=(1 + 4) * LBp * 4 * nb + weight_bytes)

    out_ph = pl.pallas_call(
        partial(_decoder_kernel, mxu_dtype=mxu_dtype),
        out_shape=jax.ShapeDtypeStruct((nb, 4, LBp), jnp.float32),
        grid=(nb,),
        in_specs=[
            pl.BlockSpec((1, 1, LBp), lambda g: (g, 0, 0)),
            pl.BlockSpec(masks.shape, lambda g: (0, 0)),
            pl.BlockSpec(t1.shape, lambda g: (0, 0)),
            pl.BlockSpec(b1c.shape, lambda g: (0, 0)),
            pl.BlockSpec(W2.shape, lambda g: (0, 0)),
            pl.BlockSpec(b2c.shape, lambda g: (0, 0)),
            pl.BlockSpec(W3m.shape, lambda g: (0, 0)),
            pl.BlockSpec(W3l.shape, lambda g: (0, 0)),
            pl.BlockSpec(W3r.shape, lambda g: (0, 0)),
            pl.BlockSpec(b3c.shape, lambda g: (0, 0)),
        ],
        out_specs=pl.BlockSpec((1, 4, LBp), lambda g: (g, 0, 0)),
        compiler_params=pltpu.CompilerParams(
            dimension_semantics=("parallel",),
            vmem_limit_bytes=32 * 1024 * 1024),
        cost_estimate=cost,
    )(x_blk, masks, t1, b1c, W2, b2c, W3m, W3l, W3r, b3c)

    # Phase-major -> natural (B, 1, 4L): pure layout plumbing outside the kernel.
    y = out_ph[:, :, :LB].reshape(nb, 4, BB, L)
    y = jnp.transpose(y, (0, 2, 3, 1))          # (nb, BB, L, 4)
    y = y.reshape(Bp, 1, L_out)[:B]
    return y


# ---------------------------------------------------------------------------
# Pure-JAX reference (correctness check only)
# ---------------------------------------------------------------------------
def _ref_conv_transpose(x, w, b):
    K = w.shape[-1]
    w_conv = jnp.flip(jnp.transpose(w, (1, 0, 2)), axis=-1)   # (Cout, Cin, K)
    y = lax.conv_general_dilated(
        x, w_conv, window_strides=(1,),
        padding=[(K - 1 - PAD_T, K - 1 - PAD_T + OUTPAD)],
        lhs_dilation=(STRIDE,),
        dimension_numbers=("NCH", "OIH", "NCH"))
    return y + b[None, :, None]


def _ref_conv1d(x, w, b):
    y = lax.conv_general_dilated(
        x, w, window_strides=(1,), padding=[(PAD_C, PAD_C)],
        dimension_numbers=("NCH", "OIH", "NCH"))
    return y + b[None, :, None]


def reference_forward(x, p):
    if x.ndim == 2:
        x = x[:, None, :]
    h = jax.nn.relu(_ref_conv_transpose(x, p["w1"], p["b1"]))
    h = jax.nn.relu(_ref_conv_transpose(h, p["w2"], p["b2"]))
    return _ref_conv1d(h, p["w3"], p["b3"])


if __name__ == "__main__":
    key = jax.random.PRNGKey(0)
    ks = jax.random.split(key, 7)

    # Deterministic synthetic parameters (shapes match the torch module).
    params = {
        "w1": 0.2 * jax.random.normal(ks[0], (1, NCH, KT), jnp.float32),     # ConvT1d(1,16,5)
        "b1": 0.1 * jax.random.normal(ks[1], (NCH,), jnp.float32),
        "w2": 0.2 * jax.random.normal(ks[2], (NCH, NCH, KT), jnp.float32),   # ConvT1d(16,16,5)
        "b2": 0.1 * jax.random.normal(ks[3], (NCH,), jnp.float32),
        "w3": 0.2 * jax.random.normal(ks[4], (1, NCH, KC), jnp.float32),     # Conv1d(16,1,3)
        "b3": 0.1 * jax.random.normal(ks[5], (1,), jnp.float32),
    }

    # Small latent input consistent with the module: (batch=2, seq=16).
    x = jax.random.normal(ks[6], (2, 16), jnp.float32)

    ref = jax.block_until_ready(reference_forward(x, params))

    # f32-operand path: tight parity with the f32 reference.
    out32 = jax.block_until_ready(my_decoder_forward(x, params, mxu_bf16=False))
    assert out32.shape == (2, 1, 64), out32.shape
    err32 = float(jnp.max(jnp.abs(out32 - ref)))
    assert err32 < 1e-4, err32

    # bf16-MXU-operand path (default, v6e/v7x fast path): relaxed tolerance.
    out16 = jax.block_until_ready(my_decoder_forward(x, params, mxu_bf16=True))
    assert out16.shape == (2, 1, 64), out16.shape
    err16 = float(jnp.max(jnp.abs(out16 - ref)))
    assert err16 < 5e-2, err16

    print("KERNEL_OK")
</pallas_src>

<mosaic_0001>
module attributes {stable_mosaic.version = 11 : i64} {
  func.func @_decoder_kernel(%arg0: i32, %arg1: memref<1x1x128xf32, #tpu.memory_space<vmem>>, %arg2: memref<2x128xf32, #tpu.memory_space<vmem>>, %arg3: memref<16x5xf32, #tpu.memory_space<vmem>>, %arg4: memref<16x1xf32, #tpu.memory_space<vmem>>, %arg5: memref<64x64xf32, #tpu.memory_space<vmem>>, %arg6: memref<64x1xf32, #tpu.memory_space<vmem>>, %arg7: memref<4x64xf32, #tpu.memory_space<vmem>>, %arg8: memref<4x16xf32, #tpu.memory_space<vmem>>, %arg9: memref<4x16xf32, #tpu.memory_space<vmem>>, %arg10: memref<4x1xf32, #tpu.memory_space<vmem>>, %arg11: memref<1x4x128xf32, #tpu.memory_space<vmem>>) attributes {dimension_semantics = [#tpu.dimension_semantics<parallel>], iteration_bounds = array<i64: 1>, scalar_prefetch = 0 : i64, scratch_operands = 0 : i64, tpu.core_type = #tpu.core_type<tc>, window_params = [{transform_indices = @transform_0, window_bounds = array<i64: 1, 1, 128>}, {pipeline_mode = #tpu.pipeline_mode<synchronous>, transform_indices = @transform_1, window_bounds = array<i64: 2, 128>}, {pipeline_mode = #tpu.pipeline_mode<synchronous>, transform_indices = @transform_2, window_bounds = array<i64: 16, 5>}, {pipeline_mode = #tpu.pipeline_mode<synchronous>, transform_indices = @transform_3, window_bounds = array<i64: 16, 1>}, {pipeline_mode = #tpu.pipeline_mode<synchronous>, transform_indices = @transform_4, window_bounds = array<i64: 64, 64>}, {pipeline_mode = #tpu.pipeline_mode<synchronous>, transform_indices = @transform_5, window_bounds = array<i64: 64, 1>}, {pipeline_mode = #tpu.pipeline_mode<synchronous>, transform_indices = @transform_6, window_bounds = array<i64: 4, 64>}, {pipeline_mode = #tpu.pipeline_mode<synchronous>, transform_indices = @transform_7, window_bounds = array<i64: 4, 16>}, {pipeline_mode = #tpu.pipeline_mode<synchronous>, transform_indices = @transform_8, window_bounds = array<i64: 4, 16>}, {pipeline_mode = #tpu.pipeline_mode<synchronous>, transform_indices = @transform_9, window_bounds = array<i64: 4, 1>}, {transform_indices = @transform_10, window_bounds = array<i64: 1, 4, 128>}]} {
    %c0 = arith.constant 0 : index
    %c0_0 = arith.constant 0 : index
    %c0_1 = arith.constant 0 : index
    %0 = vector.load %arg1[%c0, %c0_0, %c0_1] : memref<1x1x128xf32, #tpu.memory_space<vmem>>, vector<1x1x128xf32>
    %1 = vector.shape_cast %0 : vector<1x1x128xf32> to vector<1x128xf32>
    %c0_2 = arith.constant 0 : index
    %c0_3 = arith.constant 0 : index
    %2 = vector.load %arg2[%c0_2, %c0_3] : memref<2x128xf32, #tpu.memory_space<vmem>>, vector<1x128xf32>
    %c1 = arith.constant 1 : index
    %c0_4 = arith.constant 0 : index
    %3 = vector.load %arg2[%c1, %c0_4] : memref<2x128xf32, #tpu.memory_space<vmem>>, vector<1x128xf32>
    %c0_5 = arith.constant 0 : index
    %c0_6 = arith.constant 0 : index
    %4 = vector.load %arg3[%c0_5, %c0_6] : memref<16x5xf32, #tpu.memory_space<vmem>>, vector<16x5xf32>
    %c0_7 = arith.constant 0 : index
    %c0_8 = arith.constant 0 : index
    %5 = vector.load %arg4[%c0_7, %c0_8] : memref<16x1xf32, #tpu.memory_space<vmem>>, vector<16x1xf32>
    %c127_i32 = arith.constant 127 : i32
    %6 = tpu.dynamic_rotate %1 by %c127_i32 dim 1 : vector<1x128xf32>, i32 -> vector<1x128xf32>
    %7 = arith.mulf %6, %2 : vector<1x128xf32>
    %c1_i32 = arith.constant 1 : i32
    %8 = tpu.dynamic_rotate %1 by %c1_i32 dim 1 : vector<1x128xf32>, i32 -> vector<1x128xf32>
    %9 = arith.mulf %8, %3 : vector<1x128xf32>
    %10 = vector.extract_strided_slice %4 {offsets = [0, 4], sizes = [16, 1], strides = [1, 1]} : vector<16x5xf32> to vector<16x1xf32>
    %11 = vector.broadcast %10 : vector<16x1xf32> to vector<16x128xf32>
    %12 = vector.broadcast %9 : vector<1x128xf32> to vector<16x128xf32>
    %13 = arith.mulf %11, %12 : vector<16x128xf32>
    %14 = vector.extract_strided_slice %4 {offsets = [0, 2], sizes = [16, 1], strides = [1, 1]} : vector<16x5xf32> to vector<16x1xf32>
    %15 = vector.broadcast %14 : vector<16x1xf32> to vector<16x128xf32>
    %16 = vector.broadcast %1 : vector<1x128xf32> to vector<16x128xf32>
    %17 = arith.mulf %15, %16 : vector<16x128xf32>
    %18 = arith.addf %13, %17 : vector<16x128xf32>
    %19 = vector.extract_strided_slice %4 {offsets = [0, 0], sizes = [16, 1], strides = [1, 1]} : vector<16x5xf32> to vector<16x1xf32>
    %20 = vector.broadcast %19 : vector<16x1xf32> to vector<16x128xf32>
    %21 = vector.broadcast %7 : vector<1x128xf32> to vector<16x128xf32>
    %22 = arith.mulf %20, %21 : vector<16x128xf32>
    %23 = arith.addf %18, %22 : vector<16x128xf32>
    %24 = vector.broadcast %5 : vector<16x1xf32> to vector<16x128xf32>
    %25 = arith.addf %23, %24 : vector<16x128xf32>
    %cst = arith.constant 0.000000e+00 : f32
    %26 = vector.broadcast %cst : f32 to vector<16x128xf32>
    %27 = arith.maximumf %25, %26 : vector<16x128xf32>
    %28 = vector.extract_strided_slice %4 {offsets = [0, 3], sizes = [16, 1], strides = [1, 1]} : vector<16x5xf32> to vector<16x1xf32>
    %29 = vector.broadcast %28 : vector<16x1xf32> to vector<16x128xf32>
    %30 = vector.broadcast %1 : vector<1x128xf32> to vector<16x128xf32>
    %31 = arith.mulf %29, %30 : vector<16x128xf32>
    %32 = vector.extract_strided_slice %4 {offsets = [0, 1], sizes = [16, 1], strides = [1, 1]} : vector<16x5xf32> to vector<16x1xf32>
    %33 = vector.broadcast %32 : vector<16x1xf32> to vector<16x128xf32>
    %34 = vector.broadcast %7 : vector<1x128xf32> to vector<16x128xf32>
    %35 = arith.mulf %33, %34 : vector<16x128xf32>
    %36 = arith.addf %31, %35 : vector<16x128xf32>
    %37 = vector.broadcast %5 : vector<16x1xf32> to vector<16x128xf32>
    %38 = arith.addf %36, %37 : vector<16x128xf32>
    %cst_9 = arith.constant 0.000000e+00 : f32
    %39 = vector.broadcast %cst_9 : f32 to vector<16x128xf32>
    %40 = arith.maximumf %38, %39 : vector<16x128xf32>
    %c0_10 = arith.constant 0 : index
    %c0_11 = arith.constant 0 : index
    %41 = vector.load %arg5[%c0_10, %c0_11] : memref<64x64xf32, #tpu.memory_space<vmem>>, vector<64x64xf32>
    %c1_i32_12 = arith.constant 1 : i32
    %42 = tpu.dynamic_rotate %40 by %c1_i32_12 dim 1 : vector<16x128xf32>, i32 -> vector<16x128xf32>
    %43 = vector.broadcast %3 : vector<1x128xf32> to vector<16x128xf32>
    %44 = arith.mulf %42, %43 : vector<16x128xf32>
    %c127_i32_13 = arith.constant 127 : i32
    %45 = tpu.dynamic_rotate %27 by %c127_i32_13 dim 1 : vector<16x128xf32>, i32 -> vector<16x128xf32>
    %46 = vector.broadcast %2 : vector<1x128xf32> to vector<16x128xf32>
    %47 = arith.mulf %45, %46 : vector<16x128xf32>
    %48 = tpu.concatenate %44, %27, %40, %47 in 0 : vector<16x128xf32>, vector<16x128xf32>, vector<16x128xf32>, vector<16x128xf32> -> vector<64x128xf32>
    %cst_14 = arith.constant dense<0.000000e+00> : vector<64x128xf32>
    %49 = tpu.matmul %41, %48, %cst_14 {dimension_numbers = #tpu.dot_dimension_numbers<[1], [0], [0], [1], [0, 0, 1, 1], [], []>} : vector<64x64xf32>, vector<64x128xf32>, vector<64x128xf32> -> vector<64x128xf32>
    %c0_15 = arith.constant 0 : index
    %c0_16 = arith.constant 0 : index
    %50 = vector.load %arg6[%c0_15, %c0_16] : memref<64x1xf32, #tpu.memory_space<vmem>>, vector<64x1xf32>
    %51 = vector.broadcast %50 : vector<64x1xf32> to vector<64x128xf32>
    %52 = arith.addf %49, %51 : vector<64x128xf32>
    %cst_17 = arith.constant 0.000000e+00 : f32
    %53 = vector.broadcast %cst_17 : f32 to vector<64x128xf32>
    %54 = arith.maximumf %52, %53 : vector<64x128xf32>
    %c0_18 = arith.constant 0 : index
    %c0_19 = arith.constant 0 : index
    %55 = vector.load %arg7[%c0_18, %c0_19] : memref<4x64xf32, #tpu.memory_space<vmem>>, vector<4x64xf32>
    %cst_20 = arith.constant dense<0.000000e+00> : vector<4x128xf32>
    %56 = tpu.matmul %55, %54, %cst_20 {dimension_numbers = #tpu.dot_dimension_numbers<[1], [0], [0], [1], [0, 0, 1, 1], [], []>} : vector<4x64xf32>, vector<64x128xf32>, vector<4x128xf32> -> vector<4x128xf32>
    %c0_21 = arith.constant 0 : index
    %c0_22 = arith.constant 0 : index
    %57 = vector.load %arg8[%c0_21, %c0_22] : memref<4x16xf32, #tpu.memory_space<vmem>>, vector<4x16xf32>
    %58 = vector.extract_strided_slice %54 {offsets = [48, 0], sizes = [16, 128], strides = [1, 1]} : vector<64x128xf32> to vector<16x128xf32>
    %c1_i32_23 = arith.constant 1 : i32
    %59 = tpu.dynamic_rotate %58 by %c1_i32_23 dim 1 : vector<16x128xf32>, i32 -> vector<16x128xf32>
    %60 = vector.broadcast %3 : vector<1x128xf32> to vector<16x128xf32>
    %61 = arith.mulf %59, %60 : vector<16x128xf32>
    %cst_24 = arith.constant dense<0.000000e+00> : vector<4x128xf32>
    %62 = tpu.matmul %57, %61, %cst_24 {dimension_numbers = #tpu.dot_dimension_numbers<[1], [0], [0], [1], [0, 0, 1, 1], [], []>} : vector<4x16xf32>, vector<16x128xf32>, vector<4x128xf32> -> vector<4x128xf32>
    %63 = arith.addf %56, %62 : vector<4x128xf32>
    %c0_25 = arith.constant 0 : index
    %c0_26 = arith.constant 0 : index
    %64 = vector.load %arg9[%c0_25, %c0_26] : memref<4x16xf32, #tpu.memory_space<vmem>>, vector<4x16xf32>
    %65 = vector.extract_strided_slice %54 {offsets = [0, 0], sizes = [16, 128], strides = [1, 1]} : vector<64x128xf32> to vector<16x128xf32>
    %c127_i32_27 = arith.constant 127 : i32
    %66 = tpu.dynamic_rotate %65 by %c127_i32_27 dim 1 : vector<16x128xf32>, i32 -> vector<16x128xf32>
    %67 = vector.broadcast %2 : vector<1x128xf32> to vector<16x128xf32>
    %68 = arith.mulf %66, %67 : vector<16x128xf32>
    %cst_28 = arith.constant dense<0.000000e+00> : vector<4x128xf32>
    %69 = tpu.matmul %64, %68, %cst_28 {dimension_numbers = #tpu.dot_dimension_numbers<[1], [0], [0], [1], [0, 0, 1, 1], [], []>} : vector<4x16xf32>, vector<16x128xf32>, vector<4x128xf32> -> vector<4x128xf32>
    %70 = arith.addf %63, %69 : vector<4x128xf32>
    %c0_29 = arith.constant 0 : index
    %c0_30 = arith.constant 0 : index
    %71 = vector.load %arg10[%c0_29, %c0_30] : memref<4x1xf32, #tpu.memory_space<vmem>>, vector<4x1xf32>
    %72 = vector.broadcast %71 : vector<4x1xf32> to vector<4x128xf32>
    %73 = arith.addf %70, %72 : vector<4x128xf32>
    %c0_31 = arith.constant 0 : index
    %c0_32 = arith.constant 0 : index
    %c0_33 = arith.constant 0 : index
    %74 = vector.load %arg11[%c0_31, %c0_32, %c0_33] : memref<1x4x128xf32, #tpu.memory_space<vmem>>, vector<1x4x128xf32>
    %75 = vector.shape_cast %74 : vector<1x4x128xf32> to vector<4x128xf32>
    %76 = vector.shape_cast %73 : vector<4x128xf32> to vector<1x4x128xf32>
    tpu.vector_store %arg11[%c0_31, %c0_32, %c0_33], %76 {strides = array<i32>} : memref<1x4x128xf32, #tpu.memory_space<vmem>>, vector<1x4x128xf32>,
    return
  }
  func.func @transform_0(%arg0: i32) -> (i32, i32, i32) {
    %c0_i32 = arith.constant 0 : i32
    %c0_i32_0 = arith.constant 0 : i32
    %c0_i32_1 = arith.constant 0 : i32
    return %arg0, %c0_i32, %c0_i32_0 : i32, i32, i32
  }
  func.func @transform_1(%arg0: i32) -> (i32, i32) {
    %c0_i32 = arith.constant 0 : i32
    %c0_i32_0 = arith.constant 0 : i32
    %c0_i32_1 = arith.constant 0 : i32
    return %c0_i32, %c0_i32_0 : i32, i32
  }
  func.func @transform_2(%arg0: i32) -> (i32, i32) {
    %c0_i32 = arith.constant 0 : i32
    %c0_i32_0 = arith.constant 0 : i32
    %c0_i32_1 = arith.constant 0 : i32
    return %c0_i32, %c0_i32_0 : i32, i32
  }
  func.func @transform_3(%arg0: i32) -> (i32, i32) {
    %c0_i32 = arith.constant 0 : i32
    %c0_i32_0 = arith.constant 0 : i32
    %c0_i32_1 = arith.constant 0 : i32
    return %c0_i32, %c0_i32_0 : i32, i32
  }
  func.func @transform_4(%arg0: i32) -> (i32, i32) {
    %c0_i32 = arith.constant 0 : i32
    %c0_i32_0 = arith.constant 0 : i32
    %c0_i32_1 = arith.constant 0 : i32
    return %c0_i32, %c0_i32_0 : i32, i32
  }
  func.func @transform_5(%arg0: i32) -> (i32, i32) {
    %c0_i32 = arith.constant 0 : i32
    %c0_i32_0 = arith.constant 0 : i32
    %c0_i32_1 = arith.constant 0 : i32
    return %c0_i32, %c0_i32_0 : i32, i32
  }
  func.func @transform_6(%arg0: i32) -> (i32, i32) {
    %c0_i32 = arith.constant 0 : i32
    %c0_i32_0 = arith.constant 0 : i32
    %c0_i32_1 = arith.constant 0 : i32
    return %c0_i32, %c0_i32_0 : i32, i32
  }
  func.func @transform_7(%arg0: i32) -> (i32, i32) {
    %c0_i32 = arith.constant 0 : i32
    %c0_i32_0 = arith.constant 0 : i32
    %c0_i32_1 = arith.constant 0 : i32
    return %c0_i32, %c0_i32_0 : i32, i32
  }
  func.func @transform_8(%arg0: i32) -> (i32, i32) {
    %c0_i32 = arith.constant 0 : i32
    %c0_i32_0 = arith.constant 0 : i32
    %c0_i32_1 = arith.constant 0 : i32
    return %c0_i32, %c0_i32_0 : i32, i32
  }
  func.func @transform_9(%arg0: i32) -> (i32, i32) {
    %c0_i32 = arith.constant 0 : i32
    %c0_i32_0 = arith.constant 0 : i32
    %c0_i32_1 = arith.constant 0 : i32
    return %c0_i32, %c0_i32_0 : i32, i32
  }
  func.func @transform_10(%arg0: i32) -> (i32, i32, i32) {
    %c0_i32 = arith.constant 0 : i32
    %c0_i32_0 = arith.constant 0 : i32
    %c0_i32_1 = arith.constant 0 : i32
    return %arg0, %c0_i32, %c0_i32_0 : i32, i32, i32
  }
}

</mosaic_0001>

<bundles_post_ra>
// kernel: tpu_custom_call.1
= control target key start
LH: loop header
LB: loop body
LE: loop exit
PB: predicated region body
PF: predicated region fallthrough
CT: control target
= control target key end

     0   :  { %v792_v1 = vmov 1   ;;  %v793_v2 = vmov 3   ;;  %s998_s0 = inlined_call_operand.vmem [shape: f32[1,1,128], index: 0, kind: input, shape index: {}]   ;;  %s999_s1 = inlined_call_operand.vmem [shape: f32[2,128], index: 1, kind: input, shape index: {}]   ;;  %s1000_s2 = inlined_call_operand.vmem [shape: f32[16,5], index: 2, kind: input, shape index: {}]   ;;  %s1001_s3 = inlined_call_operand.vmem [shape: f32[16,1], index: 3, kind: input, shape index: {}]   ;;  %s1002_s4 = inlined_call_operand.vmem [shape: f32[64,64], index: 4, kind: input, shape index: {}]   ;;  %s1003_s5 = inlined_call_operand.vmem [shape: f32[64,1], index: 5, kind: input, shape index: {}]   ;;  %s1004_s6 = inlined_call_operand.vmem [shape: f32[4,64], index: 6, kind: input, shape index: {}]   ;;  %s1005_s7 = inlined_call_operand.vmem [shape: f32[4,16], index: 7, kind: input, shape index: {}]   ;;  %s1006_s8 = inlined_call_operand.vmem [shape: f32[4,16], index: 8, kind: input, shape index: {}]   ;;  %s1007_s9 = inlined_call_operand.vmem [shape: f32[4,1], index: 9, kind: input, shape index: {}]   ;;  %s1008_s10 = inlined_call_operand.hbm [shape: f32[1,4,128], index: 10, kind: output, shape index: {}]  }
   0x1   :  { %v39_v0 = vld [vmem:[%s1000_s2] sm:$0xff]  ;;  %760 = vset.pattern.permute.xlu1 %v792_v1  ;;  %759 = vset.pattern.permute.xlu0 %v793_v2 }
   0x2   :  { %124 = vperm.xlu1 %760, %v39_v0   ;;  %114 = vperm.xlu0 %759, %v39_v0  }
   0x3   :  { %15 = vsyncpa [#allocation3], 0  ;;  %v40_v3 = vld [vmem:[%s1000_s2 + $0x8] sm:$0xff]  ;;  %v36_v4 = vld [vmem:[%s998_s0] sm:$0x1]  ;;  %v794_v6 = vmov 0   ;;  %v59_v10 = vlaneseq }
   0x4   :  { %v41_v5 = vld [vmem:[%s1001_s3] sm:$0xff]  ;;  %s795_s21 = smov 127   ;;  %v42_v7 = vld [vmem:[%s1001_s3 + $0x8] sm:$0xff]  ;;  %v796_v8 = vmov 4   ;;  %v797_v9 = vmov 2   ;;  %s798_s0 = smov 1  }
   0x5   :  { %v60_v11 = vshrl.u32 %v59_v10, 7  ;;  %v880_v17 = vld [vmem:[%s999_s1] sm:$0x1]  ;;  %v38_v40 = vld [vmem:[%s999_s1 + $0x1] sm:$0x1]  ;;  %vm215_vm0 = vcmask 523264  }
   0x6   :  { %128 = vperm.xlu1 %760, %v40_v3   ;;  %118 = vperm.xlu0 %759, %v40_v3   ;;  %v139_v53 = vld [vmem:[%s1002_s4] sm:$0xff]  ;;  %v174_v61 = vld [vmem:[%s1003_s5 + $0x38] sm:$0xff]  ;;  %v173_v62 = vld [vmem:[%s1003_s5 + $0x30] sm:$0xff]  ;;  %vm800_vm1 = vmmov 0   ;;  %vm361_vm2 = vcmask 130048  }
   0x7   :  { %v875_v14 = vsub.s32 0, %v60_v11  ;;  %669 = vmatprep.mubr.msk.f32.mxu0 %vm215_vm0, %v139_v53  ;;  %v168_v63 = vld [vmem:[%s1003_s5 + $0x8] sm:$0xff]  ;;  %v170_v1 = vld [vmem:[%s1003_s5 + $0x18] sm:$0xff]  ;;  %v169_v2 = vld [vmem:[%s1003_s5 + $0x10] sm:$0xff] }
   0x8   :  { %v172_v53 = vld [vmem:[%s1003_s5 + $0x28] sm:$0xff] }
   0x9   :  { %v77_v18 = vrot.slane %v36_v4, %v875_v14 }
   0xa   :  { %761 = vset.pattern.permute.xlu1 %v794_v6  ;;  %43 = vrot.lane.b32.xlu0 %v36_v4, %s795_s21 }
   0xb   :  { %101 = vperm.xlu1 %761, %v41_v5   ;;  %762 = vset.pattern.permute.xlu0 %v794_v6 }
   0xe   :  { %106 = vperm.xlu0 %762, %v42_v7  }
   0xf   :  { %763 = vset.pattern.permute.xlu1 %v796_v8 }
  0x10   :  { %51 = vperm.xlu1 %763, %v39_v0  }
  0x12   :  { %764 = vset.pattern.permute.xlu0 %v797_v9 }
  0x13   :  { %66 = vperm.xlu0 %764, %v39_v0  }
  0x14   :  { %56 = vperm.xlu1 %763, %v40_v3  }
  0x17   :  { %767 = vset.pattern.permute.xlu0 %v794_v6 }
  0x18   :  { %765 = vset.pattern.permute.xlu1 %v797_v9  ;;  %88 = vperm.xlu0 %767, %v40_v3   ;;  %v922_v9 = vrot.slane %v880_v17, %v875_v14 }
  0x19   :  { %70 = vperm.xlu1 %765, %v40_v3   ;;  %v916_v3 = vrot.slane %v38_v40, %v875_v14 }
  0x1d   :  { %766 = vset.pattern.permute.xlu1 %v794_v6 }
  0x1e   :  { %84 = vperm.xlu1 %766, %v39_v0   ;;  %v167_v0 = vld [vmem:[%s1003_s5] sm:$0xff] }
  0x22   :  { %46 = vrot.lane.b32.xlu1 %v36_v4, %s798_s0 }
  0x81   :  { %v125_v12 = vpop.permute.xlu1 %124  ;;  %v115_v13 = vpop.permute.xlu0 %114 }
  0x82   :  { %v121_v22 = vmul.f32 %v115_v13, %v77_v18 }
  0x85   :  { %v129_v15 = vpop.permute.xlu1 %128  ;;  %v119_v16 = vpop.permute.xlu0 %118 }
  0x86   :  { %v122_v23 = vmul.f32 %v119_v16, %v77_v18  ;;  %v140_v16 = vld [vmem:[%s1002_s4 + $0x8] sm:$0xff] }
  0x89   :  { %v44_v19 = vpop.permute.xlu0 %43 }
  0x8a   :  { %v45_v20 = vmul.f32 %v44_v19, %v880_v17  ;;  %v102_v21 = vpop.permute.xlu1 %101  ;;  %v143_v17 = vld [vmem:[%s1002_s4 + $0x20] sm:$0xff]  ;;  %v144_v19 = vld [vmem:[%s1002_s4 + $0x28] sm:$0xff] }
  0x8c   :  { %v94_v24 = vrot.slane %v45_v20, %v875_v14  ;;  %v145_v20 = vld [vmem:[%s1002_s4 + $0x30] sm:$0xff] }
  0x8d   :  { %v107_v30 = vpop.permute.xlu0 %106 }
  0x8e   :  { %v131_v25 = vmul.f32 %v125_v12, %v94_v24  ;;  %v132_v26 = vmul.f32 %v129_v15, %v94_v24 }
  0x8f   :  { %v52_v27 = vpop.permute.xlu1 %51 }
  0x90   :  { %v133_v28 = vadd.f32 %v131_v25, %v121_v22  ;;  %v134_v29 = vadd.f32 %v132_v26, %v122_v23 }
  0x92   :  { %v135_v31 = vadd.f32 %v133_v28, %v102_v21  ;;  %v136_v32 = vadd.f32 %v134_v29, %v107_v30  ;;  %v67_v39 = vpop.permute.xlu0 %66 }
  0x93   :  { %v57_v33 = vpop.permute.xlu1 %56  ;;  %v79_v45 = vmul.f32 %v77_v18, %v67_v39  ;;  %v799_v39 = vmov 0.0|0.0  }
  0x94   :  { %v137_v34 = vmax.f32 %v135_v31, 0.0  ;;  %v138_v35 = vmax.f32 %v136_v32, 0.0  ;;  %730 = vmatprep.subr.bf16.mxu1 %v799_v39 }
  0x96   :  { %149 = vrot.lane.b32.xlu0 %v138_v35, %s798_s0  ;;  %147 = vrot.lane.b32.xlu1 %v137_v34, %s798_s0  ;;  %v722_v36 = vpack.c.bf16 %v138_v35, %v137_v34 }
  0x97   :  { %v89_v43 = vpop.permute.xlu0 %88 }
  0x98   :  { %v71_v37 = vpop.permute.xlu1 %70  ;;  %v96_v49 = vmul.f32 %v94_v24, %v89_v43 }
  0x99   :  { %v80_v46 = vmul.f32 %v77_v18, %v71_v37  ;;  %v141_v18 = vld [vmem:[%s1002_s4 + $0x10] sm:$0xff] }
  0x9d   :  { %v85_v38 = vpop.permute.xlu1 %84 }
  0x9e   :  { %v95_v50 = vmul.f32 %v94_v24, %v85_v38 }
  0xa1   :  { %v47_v41 = vpop.permute.xlu1 %46 }
  0xa2   :  { %v48_v42 = vmul.f32 %v47_v41, %v38_v40 }
  0xa4   :  { %v62_v44 = vrot.slane %v48_v42, %v875_v14  ;;  %v142_v14 = vld [vmem:[%s1002_s4 + $0x18] sm:$0xff] }
  0xa6   :  { %v63_v47 = vmul.f32 %v62_v44, %v52_v27  ;;  %v64_v48 = vmul.f32 %v62_v44, %v57_v33 }
  0xa8   :  { %v81_v51 = vadd.f32 %v79_v45, %v63_v47  ;;  %v82_v52 = vadd.f32 %v80_v46, %v64_v48  ;;  %v801_v45 = vmov 0.0  }
  0xa9   :  { %685 = vmatprep.mubr.msk.f32.mxu1 %vm800_vm1, %v801_v45 }
  0xaa   :  { %v98_v54 = vadd.f32 %v96_v49, %v82_v52  ;;  %v97_v55 = vadd.f32 %v95_v50, %v81_v51 }
  0xac   :  { %v110_v56 = vadd.f32 %v107_v30, %v98_v54  ;;  %v109_v57 = vadd.f32 %v102_v21, %v97_v55  ;;  %v146_v21 = vld [vmem:[%s1002_s4 + $0x38] sm:$0xff]  ;;  %v171_v54 = vld [vmem:[%s1003_s5 + $0x20] sm:$0xff] }
  0xad   :  { %v589_v55 = vld [vmem:[%s1007_s9] sm:$0xf] }
  0xae   :  { %v112_v58 = vmax.f32 %v110_v56, 0.0  ;;  %v111_v59 = vmax.f32 %v109_v57, 0.0 }
  0xb0   :  { %159 = vrot.lane.b32.xlu0 %v112_v58, %s795_s21  ;;  %157 = vrot.lane.b32.xlu1 %v111_v59, %s795_s21  ;;  %v718_v60 = vpack.c.bf16 %v112_v58, %v111_v59 }
  0xb4   :  { %212 = vperm.xlu0 %767, %v174_v61   ;;  %207 = vperm.xlu1 %766, %v173_v62   ;;  %v354_v61 = vld [vmem:[%s1005_s7] sm:$0xf] }
  0xb8   :  { %182 = vperm.xlu0 %767, %v168_v63   ;;  %177 = vperm.xlu1 %766, %v167_v0  }
  0xbc   :  { %192 = vperm.xlu0 %767, %v170_v1   ;;  %187 = vperm.xlu1 %766, %v169_v2  }
 0x108   :  { %v150_v4 = vpop.permute.xlu0 %149  ;;  %v148_v5 = vpop.permute.xlu1 %147 }
 0x109   :  { %v156_v6 = vmul.f32 %v916_v3, %v150_v4  ;;  %v155_v7 = vmul.f32 %v916_v3, %v148_v5 }
 0x10b   :  { %v714_v8 = vpack.c.bf16 %v156_v6, %v155_v7 }
 0x10d   :  { %715 = vmatprep.subr.bf16.mxu0 %v714_v8 }
 0x10e   :  { %717 = vmatpush3.bf16.msra.mxu0 %v714_v8 }
 0x10f   :  { %719 = vmatprep.subr.bf16.mxu0 %v718_v60 }
 0x112   :  { %721 = vmatpush3.bf16.msra.mxu0 %v718_v60 }
 0x113   :  { %723 = vmatprep.subr.bf16.mxu0 %v722_v36 }
 0x116   :  { %725 = vmatpush3.bf16.msra.mxu0 %v722_v36 }
 0x122   :  { %v160_v10 = vpop.permute.xlu0 %159  ;;  %v158_v11 = vpop.permute.xlu1 %157 }
 0x123   :  { %v166_v12 = vmul.f32 %v922_v9, %v160_v10  ;;  %v165_v13 = vmul.f32 %v922_v9, %v158_v11  ;;  %v353_v10 = vld [vmem:[%s1004_s6] sm:$0xf]  ;;  %s802_s6 = smov [#allocation2]  }
 0x124   :  { %s603_s17 = sshll.u32 %s802_s6, 4  ;;  %s604_s17 = int_to_ptr.vmem [resolvable:$true] %s603_s17 }
 0x125   :  { %v726_v15 = vpack.c.bf16 %v166_v12, %v165_v13  ;;  %v508_v12 = vld [vmem:[%s1006_s8] sm:$0xf]  ;;  %s768_s18 = scalar_lea.vmem %s604_s17, 64  ;;  %p773_p1 = scmp.lt.s32.totalorder %s604_s17, %s604_s17 }
 0x126   :  { %p769_p0 = scmp.ne.s32.totalorder %s604_s17, %s768_s18  ;;  %p774_p2 = scmp.lt.s32.totalorder %s768_s18, %s768_s18 }
 0x127   :  { %727 = vmatprep.subr.bf16.mxu0 %v726_v15 }
 0x128   :  { %729 = vmatpush3.bf16.msra.mxu0 %v726_v15  ;;  %p775_p3 = por %p774_p2, %p773_p1 }
 0x12a   :  { %p776_p4 = pnand %p775_p3, %p769_p0 }
 0x12b   :  { %670 = vmatmul.mubr.msk.f32.vlgmr.msra.gmra.mrb[0].mxu0 %vm215_vm0, %v140_v16 }
 0x12c   :  { %672 = vmatprep.mubr.msk.f32.mxu0 %vm215_vm0, %v141_v18 }
 0x12f   :  { %673 = vmatmul.mubr.msk.f32.gmra.mrb[2].mxu0 %vm215_vm0, %v142_v14 }
 0x130   :  { %675 = vmatprep.mubr.msk.f32.mxu0 %vm215_vm0, %v143_v17 }
 0x133   :  { %676 = vmatmul.mubr.msk.f32.gmra.mrb[4].mxu0 %vm215_vm0, %v144_v19  ;;  %v213_v22 = vpop.permute.xlu0 %212  ;;  %v208_v23 = vpop.permute.xlu1 %207 }
 0x134   :  { %678 = vmatprep.mubr.msk.f32.mxu0 %vm215_vm0, %v145_v20 }
 0x137   :  { %679 = vmatmul.mubr.msk.f32.gmra.mrb[6].mxu0 %vm215_vm0, %v146_v21  ;;  %v183_v24 = vpop.permute.xlu0 %182  ;;  %v178_v25 = vpop.permute.xlu1 %177 }
 0x13b   :  { %v193_v31 = vpop.permute.xlu0 %192  ;;  %v188_v34 = vpop.permute.xlu1 %187 }
 0x1fe   :  { %v671_v26 = vpop.f32.mrb[0].mxu0 }
 0x1ff   :  { %v312_v27 = vadd.f32 %v671_v26, %v183_v24  ;;  %v306_v28 = vpop.f32.mrb[1].mxu0 }
 0x200   :  { %v307_v29 = vadd.f32 %v306_v28, %v178_v25 }
 0x201   :  { %v346_v30 = vmax.f32 %v312_v27, 0.0 }
 0x202   :  { %v345_v32 = vmax.f32 %v307_v29, 0.0  ;;  %v674_v33 = vpop.f32.mrb[2].mxu0 }
 0x203   :  { %v322_v35 = vadd.f32 %v674_v33, %v193_v31  ;;  %v316_v36 = vpop.f32.mrb[3].mxu0 }
 0x204   :  { %v734_v37 = vpack.c.bf16 %v346_v30, %v345_v32  ;;  %v317_v38 = vadd.f32 %v316_v36, %v188_v34 }
 0x205   :  { %v348_v40 = vmax.f32 %v322_v35, 0.0 }
 0x206   :  { %v347_v41 = vmax.f32 %v317_v38, 0.0  ;;  %v677_v42 = vpop.f32.mrb[4].mxu0 }
 0x207   :  { %v326_v43 = vpop.f32.mrb[5].mxu0 }
 0x208   :  { %v737_v44 = vpack.c.bf16 %v348_v40, %v347_v41 }
 0x20a   :  { %v680_v46 = vpop.f32.mrb[6].mxu0 }
 0x20b   :  { %v342_v47 = vadd.f32 %v680_v46, %v213_v22  ;;  %v336_v48 = vpop.f32.mrb[7].mxu0 }
 0x20c   :  { %v337_v49 = vadd.f32 %v336_v48, %v208_v23 }
 0x20d   :  { %v352_v50 = vmax.f32 %v342_v47, 0.0 }
 0x20e   :  { %v351_v51 = vmax.f32 %v337_v49, 0.0 }
 0x20f   :  { %357 = vrot.lane.b32.xlu0 %v352_v50, %s798_s0 }
 0x210   :  { %v743_v52 = vpack.c.bf16 %v352_v50, %v351_v51  ;;  %355 = vrot.lane.b32.xlu1 %v351_v51, %s798_s0 }
 0x213   :  { %202 = vperm.xlu0 %767, %v172_v53  }
 0x214   :  { %197 = vperm.xlu1 %766, %v171_v54  }
 0x217   :  { %511 = vrot.lane.b32.xlu0 %v346_v30, %s795_s21 }
 0x218   :  { %509 = vrot.lane.b32.xlu1 %v345_v32, %s795_s21 }
 0x21c   :  { %592 = vperm.xlu1 %766, %v589_v55  }
 0x281   :  { %v358_v56 = vpop.permute.xlu0 %357 }
 0x282   :  { %v360_v57 = vmul.f32 %v358_v56, %v916_v3  ;;  %v356_v58 = vpop.permute.xlu1 %355 }
 0x283   :  { %v359_v59 = vmul.f32 %v356_v58, %v916_v3 }
 0x285   :  { %v731_v60 = vpack.c.bf16 %v360_v57, %v359_v59 }
 0x287   :  { %732 = vmatpush3.bf16.msra.mxu1 %v731_v60 }
 0x288   :  { %733 = vmatprep.subr.bf16.mxu1 %v799_v39 }
 0x28a   :  { %686 = vmatmul.mubr.msk.f32.vlgmr.msra.gmra.mrb[0].mxu1 %vm361_vm2, %v354_v61 }
 0x28b   :  { %735 = vmatpush3.bf16.msra.mxu1 %v734_v37  ;;  %704 = vmatprep.mubr.msk.f32.mxu1 %vm800_vm1, %v801_v45 }
 0x28c   :  { %736 = vmatprep.subr.bf16.mxu1 %v799_v39 }
 0x28f   :  { %738 = vmatpush3.bf16.msra.mxu1 %v737_v44 }
 0x290   :  { %739 = vmatprep.subr.bf16.mxu1 %v799_v39 }
 0x292   :  { %v203_v62 = vpop.permute.xlu0 %202 }
 0x293   :  { %v332_v63 = vadd.f32 %v677_v42, %v203_v62  ;;  %v198_v0 = vpop.permute.xlu1 %197 }
 0x294   :  { %v327_v1 = vadd.f32 %v326_v43, %v198_v0 }
 0x295   :  { %v350_v2 = vmax.f32 %v332_v63, 0.0 }
 0x296   :  { %v349_v3 = vmax.f32 %v327_v1, 0.0  ;;  %v512_v5 = vpop.permute.xlu0 %511 }
 0x297   :  { %v510_v6 = vpop.permute.xlu1 %509  ;;  %v514_v7 = vmul.f32 %v512_v5, %v922_v9 }
 0x298   :  { %v740_v4 = vpack.c.bf16 %v350_v2, %v349_v3  ;;  %v513_v8 = vmul.f32 %v510_v6, %v922_v9 }
 0x29a   :  { %741 = vmatpush3.bf16.msra.mxu1 %v740_v4  ;;  %v746_v11 = vpack.c.bf16 %v514_v7, %v513_v8 }
 0x29b   :  { %742 = vmatprep.subr.bf16.mxu1 %v799_v39  ;;  %v593_v20 = vpop.permute.xlu1 %592 }
 0x29e   :  { %744 = vmatpush3.bf16.msra.mxu1 %v743_v52 }
 0x29f   :  { %745 = vmatprep.subr.bf16.mxu1 %v799_v39 }
 0x2a1   :  { %705 = vmatmul.mubr.msk.f32.vlgmr.msra.gmra.mrb[2].mxu1 %vm215_vm0, %v353_v10 }
 0x2a2   :  { %747 = vmatpush3.bf16.msra.mxu1 %v746_v11  ;;  %711 = vmatprep.mubr.msk.f32.mxu1 %vm800_vm1, %v801_v45 }
 0x2a5   :  { %712 = vmatmul.mubr.msk.f32.vlgmr.msra.gmra.mrb[4].mxu1 %vm361_vm2, %v508_v12 }
 0x35d   :  { %v431_v13 = vpop.f32.mrb[0].mxu1 }
 0x35e   :  { %v687_v9 = vpop.f32.mrb[1].mxu1 }
 0x374   :  { %v504_v15 = vpop.f32.mrb[2].mxu1 }
 0x375   :  { %v505_v16 = vadd.f32 %v504_v15, %v431_v13  ;;  %v706_v18 = vpop.f32.mrb[3].mxu1 }
 0x378   :  { %v584_v14 = vpop.f32.mrb[4].mxu1 }
 0x379   :  { %v588_v17 = vadd.f32 %v584_v14, %v505_v16  ;;  %v713_v19 = vpop.f32.mrb[5].mxu1 }
 0x37b   :  { %v595_v21 = vadd.f32 %v593_v20, %v588_v17 }
 0x37d   :  { %596 = vst [vmem:[#allocation2] sm:$0xf] %v595_v21 }
 0x37e   :  { %779 = shalt.err (!%p776_p4)
}
 0x37f   :  { %s780_s20 = scalar_lea.hbm %s1008_s10, 64 }
 0x380   :  { %p781_p5 = scmp.ne.s32.totalorder %s1008_s10, %s780_s20  ;;  %p784_p6 = scmp.lt.u32.totalorder %s780_s20, %s1008_s10 }
 0x382   :  { %p786_p7 = pnand %p784_p6, %p781_p5 }
 0x384   :  { %789 = shalt.err (!%p786_p7)
}
 0x385   :  { %606 = dma.vmem_to_hbm [thread:$0]  %s604_s17, 64, %s1008_s10, [#allocation3]  }
 0x386   :  { %790 = dma.done.wait [#allocation3], 64  }
 0x387   :  { %791 = vsyncadd [#allocation3], 4294967232 }
 0x388   :  { %610 = vsyncpa [#allocation3], 1 }

</bundles_post_ra>
